<compile_context>
chip_gen: v5e
topology: v5e:2x2
jax: 0.10.0
libtpu: 0.0.40
codegen_flags: <defaults>
</compile_context>

<pallas_src>
import functools

import jax
import jax.numpy as jnp
from jax.experimental import pallas as pl
from jax.experimental.pallas import tpu as pltpu

LANES = 1024              # lane-dense last dim (large multiple of 128)
MAX_TM = 512              # 512x1024 f32 tile = 2 MiB -> 8 MiB double-buffered in+out
MIN_KERNEL_ELEMS = LANES  # below this, XLA's fused elementwise op is faster


# ---------------------------------------------------------------------------
# Kernels (VPU + EUP only; compute in f32, store in the output dtype).
# ---------------------------------------------------------------------------
def _tanh_kernel(x_ref, o_ref):
    # w == 1: a single transcendental per element (EUP slot).
    o_ref[...] = jnp.tanh(x_ref[...].astype(jnp.float32)).astype(o_ref.dtype)


def _const_scaled_tanh_kernel(x_ref, o_ref, *, w):
    # Static Python omega folded into the kernel (no SMEM operand).
    o_ref[...] = (w * jnp.tanh(x_ref[...].astype(jnp.float32))).astype(o_ref.dtype)


def _smem_scaled_tanh_kernel(w_ref, x_ref, o_ref):
    # Traced scalar omega read once from SMEM, one extra VPU mul per vreg.
    o_ref[...] = (
        w_ref[0, 0] * jnp.tanh(x_ref[...].astype(jnp.float32))
    ).astype(o_ref.dtype)


# ---------------------------------------------------------------------------
# Wrapper
# ---------------------------------------------------------------------------
def _round_up(a: int, b: int) -> int:
    return ((a + b - 1) // b) * b


def _sublane(dtype) -> int:
    # vreg sublane packing: 4-byte dtypes -> 8 rows, 2-byte -> 16, 1-byte -> 32.
    return max(8, 32 // jnp.dtype(dtype).itemsize)


def tttanh(x: jax.Array, w=1.0) -> jax.Array:
    """TTTanh forward: out = w * tanh(x). Output dtype == input dtype."""
    if not jnp.issubdtype(x.dtype, jnp.floating):
        # PyTorch's tanh raises for integer tensors; do the same instead of
        # silently truncating to zeros.
        raise TypeError(f"tttanh requires a floating dtype, got {x.dtype}")

    orig_shape = x.shape
    total = x.size
    w_is_static = isinstance(w, (int, float)) and not isinstance(w, bool)

    # Non-scalar omega: rely on plain XLA broadcasting (out of kernel scope).
    if not w_is_static and jnp.size(w) != 1:
        return (jnp.asarray(w, jnp.float32)
                * jnp.tanh(x.astype(jnp.float32))).astype(x.dtype)

    # Tiny tensors: launch + grid overhead dominates; let XLA fuse it.
    if total < MIN_KERNEL_ELEMS:
        out = jnp.tanh(x.astype(jnp.float32))
        if not (w_is_static and float(w) == 1.0):
            out = jnp.asarray(w, jnp.float32) * out
        return out.astype(x.dtype)

    # Flatten (metadata-only for contiguous arrays) to lane-dense rows.
    flat = x.reshape(-1)
    rows = pl.cdiv(total, LANES)
    padded_total = rows * LANES
    ragged = padded_total != total
    if ragged:
        # Only the < LANES ragged tail forces a pad copy; aligned sizes skip it.
        flat = jnp.pad(flat, (0, padded_total - total))
    x2 = flat.reshape(rows, LANES)

    # Row-tile: sublane-aligned for the dtype, capped at MAX_TM (v5e VMEM-safe),
    # and small enough that medium inputs still give >= 2 grid steps so the
    # "parallel" grid axis can balance across v7x's two TensorCores.
    sub = _sublane(x.dtype)
    tm = min(MAX_TM, max(sub, _round_up(pl.cdiv(rows, 2), sub)))
    grid = (pl.cdiv(rows, tm),)   # partial last block is masked by Pallas

    block = pl.BlockSpec((tm, LANES), lambda i: (i, 0))

    if w_is_static:
        wf = float(w)
        kern = (_tanh_kernel if wf == 1.0
                else functools.partial(_const_scaled_tanh_kernel, w=wf))
        in_specs = [block]
        args = (x2,)
    else:
        kern = _smem_scaled_tanh_kernel
        in_specs = [pl.BlockSpec(memory_space=pltpu.SMEM), block]
        args = (jnp.asarray(w, dtype=jnp.float32).reshape(1, 1), x2)

    out2 = pl.pallas_call(
        kern,
        out_shape=jax.ShapeDtypeStruct((rows, LANES), x.dtype),
        grid_spec=pltpu.PrefetchScalarGridSpec(
            num_scalar_prefetch=0,
            grid=grid,
            in_specs=in_specs,
            out_specs=block,
        ),
        compiler_params=pltpu.CompilerParams(
            dimension_semantics=("parallel",),  # megacore sharding on v7x
        ),
    )(*args)

    out = out2.reshape(-1)
    if ragged:
        out = out[:total]
    return out.reshape(orig_shape)


def _tttanh_ref(x, w=1.0):
    return (jnp.asarray(w, jnp.float32)
            * jnp.tanh(x.astype(jnp.float32))).astype(x.dtype)


if __name__ == "__main__":
    key = jax.random.PRNGKey(0)

    # Small shape consistent with the adapter module's activations.
    x = jax.random.normal(key, (2, 4, 16, 16), dtype=jnp.float32)

    # 1) Default omega (w == 1): tanh-only kernel path, no pad/slice (2048 elems).
    out = jax.block_until_ready(tttanh(x))
    assert out.shape == x.shape and out.dtype == x.dtype
    assert jnp.allclose(out, _tttanh_ref(x, 1.0), atol=1e-5, rtol=1e-5)

    # 2) Traced scalar omega: SMEM-operand kernel path.
    w = jnp.asarray(0.7, dtype=jnp.float32)
    out_w = jax.block_until_ready(tttanh(x, w))
    assert jnp.allclose(out_w, _tttanh_ref(x, 0.7), atol=1e-5, rtol=1e-5)

    # 3) bf16 input: dtype conversion handled inside the kernel.
    x_bf16 = x.astype(jnp.bfloat16)
    out_bf16 = jax.block_until_ready(tttanh(x_bf16, w=0.5))
    assert out_bf16.dtype == jnp.bfloat16
    ref_bf16 = _tttanh_ref(x_bf16, 0.5)
    assert jnp.allclose(out_bf16.astype(jnp.float32), ref_bf16.astype(jnp.float32),
                        atol=2e-2, rtol=2e-2)

    # 4) Ragged element count (not a multiple of LANES): small tail pad path.
    x_rag = jax.random.normal(jax.random.PRNGKey(1), (5, 300), dtype=jnp.float32)
    out_rag = jax.block_until_ready(tttanh(x_rag))
    assert out_rag.shape == x_rag.shape
    assert jnp.allclose(out_rag, _tttanh_ref(x_rag, 1.0), atol=1e-5, rtol=1e-5)

    print("KERNEL_OK")
</pallas_src>

<mosaic_0001>
module attributes {stable_mosaic.version = 11 : i64} {
  func.func @_tanh_kernel(%arg0: i32, %arg1: memref<8x1024xf32, #tpu.memory_space<vmem>>, %arg2: memref<8x1024xf32, #tpu.memory_space<vmem>>) attributes {dimension_semantics = [#tpu.dimension_semantics<parallel>], iteration_bounds = array<i64: 1>, scalar_prefetch = 0 : i64, scratch_operands = 0 : i64, tpu.core_type = #tpu.core_type<tc>, window_params = [{transform_indices = @transform_0, window_bounds = array<i64: 8, 1024>}, {transform_indices = @transform_1, window_bounds = array<i64: 8, 1024>}]} {
    %c0 = arith.constant 0 : index
    %c0_0 = arith.constant 0 : index
    %0 = vector.load %arg1[%c0, %c0_0] : memref<8x1024xf32, #tpu.memory_space<vmem>>, vector<8x1024xf32>
    %1 = math.tanh %0 : vector<8x1024xf32>
    %c0_1 = arith.constant 0 : index
    %c0_2 = arith.constant 0 : index
    %2 = vector.load %arg2[%c0_1, %c0_2] : memref<8x1024xf32, #tpu.memory_space<vmem>>, vector<8x1024xf32>
    tpu.vector_store %arg2[%c0_1, %c0_2], %1 {strides = array<i32>} : memref<8x1024xf32, #tpu.memory_space<vmem>>, vector<8x1024xf32>,
    return
  }
  func.func @transform_0(%arg0: i32) -> (i32, i32) {
    %c0_i32 = arith.constant 0 : i32
    %c0_i32_0 = arith.constant 0 : i32
    return %arg0, %c0_i32 : i32, i32
  }
  func.func @transform_1(%arg0: i32) -> (i32, i32) {
    %c0_i32 = arith.constant 0 : i32
    %c0_i32_0 = arith.constant 0 : i32
    return %arg0, %c0_i32 : i32, i32
  }
}

</mosaic_0001>

<bundles_post_ra>
// kernel: tpu_custom_call.1
= control target key start
LH: loop header
LB: loop body
LE: loop exit
PB: predicated region body
PF: predicated region fallthrough
CT: control target
= control target key end

     0   :  { %6 = vsyncpa [#allocation3], 0  ;;  %s166_s0 = inlined_call_operand.hbm [shape: f32[2,1024], index: 0, kind: input, shape index: {}]   ;;  %s167_s1 = inlined_call_operand.hbm [shape: f32[2,1024], index: 1, kind: output, shape index: {}]  }
   0x1   :  { %7 = vsyncpa [#allocation4], 0 }
   0x2   :  { %11 = vsyncadd [#allocation3], 768  ;;  %s12_s8 = sshll.u32 %s166_s0, 4  ;;  %s140_s9 = smov [#allocation2]   ;;  %s13_s8 = int_to_ptr.hbm [resolvable:$true] %s12_s8 }
   0x3   :  { %s14_s10 = sshll.u32 %s140_s9, 4  ;;  %s141_s11 = smov 256   ;;  %s15_s10 = int_to_ptr.vmem [resolvable:$true] %s14_s10 }
   0x4   :  { %s142_s12 = smov 16  }
   0x5   :  { %20 = dma.hbm_to_vmem [thread:$0]  %s13_s8, 256, %s15_s10, [#allocation3], %s141_s11, %s141_s11, %s142_s12  }
   0x6   :  { %136 = dma.done.wait [#allocation3], 1024  }
   0x7   :  { %137 = vsyncadd [#allocation3], 4294966272  ;;  %v25_v0 = vld [vmem:[#allocation2] sm:$0xff]  ;;  %v26_v1 = vld [vmem:[#allocation2 + $0x8] sm:$0xff] }
   0x8   :  { %v27_v2 = vld [vmem:[#allocation2 + $0x10] sm:$0xff]  ;;  %72 = vtanh.f32 %v25_v0  ;;  %v28_v3 = vld [vmem:[#allocation2 + $0x18] sm:$0xff]  ;;  %v29_v4 = vld [vmem:[#allocation2 + $0x20] sm:$0xff] }
   0x9   :  { %74 = vtanh.f32 %v26_v1  ;;  %v30_v5 = vld [vmem:[#allocation2 + $0x28] sm:$0xff]  ;;  %v31_v6 = vld [vmem:[#allocation2 + $0x30] sm:$0xff]  ;;  %v32_v7 = vld [vmem:[#allocation2 + $0x38] sm:$0xff] }
   0xa   :  { %76 = vtanh.f32 %v27_v2 }
   0xb   :  { %78 = vtanh.f32 %v28_v3 }
   0xc   :  { %80 = vtanh.f32 %v29_v4 }
   0xd   :  { %82 = vtanh.f32 %v30_v5 }
   0xe   :  { %v73_v8 = vpop.eup %72  ;;  %84 = vtanh.f32 %v31_v6 }
   0xf   :  { %v75_v9 = vpop.eup %74  ;;  %41 = vst [vmem:[#allocation5] sm:$0xff] %v73_v8  ;;  %86 = vtanh.f32 %v32_v7 }
  0x10   :  { %v77_v10 = vpop.eup %76  ;;  %42 = vst [vmem:[#allocation5 + $0x8] sm:$0xff] %v75_v9 }
  0x11   :  { %v79_v11 = vpop.eup %78  ;;  %43 = vst [vmem:[#allocation5 + $0x10] sm:$0xff] %v77_v10 }
  0x12   :  { %v81_v12 = vpop.eup %80  ;;  %44 = vst [vmem:[#allocation5 + $0x18] sm:$0xff] %v79_v11 }
  0x13   :  { %v83_v13 = vpop.eup %82  ;;  %45 = vst [vmem:[#allocation5 + $0x20] sm:$0xff] %v81_v12 }
  0x14   :  { %v85_v14 = vpop.eup %84  ;;  %46 = vst [vmem:[#allocation5 + $0x28] sm:$0xff] %v83_v13 }
  0x15   :  { %v87_v15 = vpop.eup %86  ;;  %47 = vst [vmem:[#allocation5 + $0x30] sm:$0xff] %v85_v14 }
  0x16   :  { %48 = vst [vmem:[#allocation5 + $0x38] sm:$0xff] %v87_v15 }
  0x17   :  { %52 = vsyncadd [#allocation4], 768  ;;  %s55_s14 = sshll.u32 %s167_s1, 4  ;;  %s143_s15 = smov [#allocation5]   ;;  %s56_s14 = int_to_ptr.hbm [resolvable:$true] %s55_s14 }
  0x18   :  { %s53_s16 = sshll.u32 %s143_s15, 4  ;;  %s54_s16 = int_to_ptr.vmem [resolvable:$true] %s53_s16 }
  0x19   :  { %61 = dma.vmem_to_hbm [thread:$0]  %s54_s16, 256, %s56_s14, [#allocation4], %s141_s11, %s141_s11, %s142_s12  }
  0x1a   :  { %138 = dma.done.wait [#allocation4], 1024  }
  0x1b   :  { %139 = vsyncadd [#allocation4], 4294966272 }
  0x1c   :  { %66 = vsyncpa [#allocation3], 1 }
  0x1d   :  { %67 = vsyncpa [#allocation4], 1 }

</bundles_post_ra>
